<compile_context>
chip_gen: v6e
topology: v6e:2x2x1
jax: 0.10.0
libtpu: 0.0.40
codegen_flags: <defaults>
</compile_context>

<pallas_src>
import jax
import jax.numpy as jnp
from jax import lax
from jax.experimental import pallas as pl
from jax.experimental.pallas import tpu as pltpu


def _round_up(x, m):
    return (x + m - 1) // m * m


def _pick_block_h(H, W, G):
    """Largest divisor of H whose f32 output tile (TH, W, 4*G) stays under ~2 MiB."""
    budget = 2 * 1024 * 1024
    cand = [th for th in range(1, H + 1)
            if H % th == 0 and th * W * (4 * G) * 4 <= budget]
    th = max(cand) if cand else 1
    # Prefer >= 2 row tiles per image so the output DMA pipelines against compute
    # and both v7x TensorCores get grid steps even at batch 1.
    if th == H and H % 2 == 0 and H >= 16:
        th = H // 2
    return th


def _unpool_kernel(xp_ref, w_ref, b_ref, o_ref):
    """One (batch, row-tile) step of the fused A/B/C/D conv.

    xp_ref block: (1, H+2, W+2, Cin)  bf16 master-padded NHWC input (full image,
                                      constant over the row-tile axis).
    w_ref  block: (3, 3, Cin, 4*G)    bf16 combined weight, groups [A, C, B, D].
    b_ref  block: (1, 4*G)            f32 combined bias.
    o_ref  block: (1, TH, W, 4*G)     f32 combined output tile (per-pixel [A|C|B|D]).
    """
    _, TH, W, n4g = o_ref.shape
    cin = xp_ref.shape[3]
    t = pl.program_id(1)
    row0 = pl.multiple_of(t * TH, TH)

    # Load only the (TH+2)-row halo window for this tile (dynamic slice on the
    # major H axis; minor dims stay full so the load is aligned).
    win = xp_ref[0, pl.ds(row0, TH + 2), :, :]                # (TH+2, W+2, Cin)

    # Hoist the sublane-misaligned column shifts out of the 9-tap loop: three
    # relayout copies instead of nine.  Flatten once so the per-tap row slices
    # below are cheap, aligned leading-dim slices.
    cols = [win[:, c:c + W, :].reshape((TH + 2) * W, cin) for c in range(3)]

    # 9 chained MXU matmuls (bf16 x bf16 -> f32 accumulate); bias added once.
    acc = None
    for r in range(3):                                        # static -> unrolled
        for c in range(3):
            patch = cols[c][r * W:(r + TH) * W, :]
            d = jnp.dot(patch, w_ref[r, c], preferred_element_type=jnp.float32)
            acc = d if acc is None else acc + d
    acc = acc + b_ref[...]                                    # f32 bias broadcast
    o_ref[0] = acc.reshape(TH, W, n4g).astype(o_ref.dtype)


def unpooling_as_convolution(x_nchw, params, *, block_h=None):
    """Forward pass of UnpoolingAsConvolution. x_nchw: (N, Cin, H, W) float32.

    Returns (N, Cout, 2H, 2W) float32, matching the PyTorch module.
    """
    wa, ba, wb, bb, wc, bc, wd, bd = params        # weights in (kh, kw, Cin, Cout)
    N, Cin, H, W = x_nchw.shape
    Cout = wa.shape[-1]

    # Pad each output group to G channels so the fused matmul N dim (4*G) is a
    # multiple of 128 lanes -> unmasked stores, full MXU width.
    G = _round_up(Cout, 32)

    # Combined 3x3 weight over the master-padded window.  Tap offsets of each
    # conv into the padded tensor: A (0,0), C (0,1), B (1,0), D (1,1).  Output
    # groups ordered by (p, q) sub-pixel: [A(0,0) | C(0,1) | B(1,0) | D(1,1)].
    w_comb = jnp.zeros((3, 3, Cin, 4 * G), jnp.float32)
    w_comb = w_comb.at[:, :, :, 0 * G:0 * G + Cout].set(wa)        # A: all 9 taps
    w_comb = w_comb.at[:, 1:3, :, 1 * G:1 * G + Cout].set(wc)      # C: cols 1..2
    w_comb = w_comb.at[1:3, :, :, 2 * G:2 * G + Cout].set(wb)      # B: rows 1..2
    w_comb = w_comb.at[1:3, 1:3, :, 3 * G:3 * G + Cout].set(wd)    # D: rows/cols 1..2
    w_comb = w_comb.astype(jnp.bfloat16)                           # MXU-native

    b_comb = jnp.zeros((4, G), jnp.float32)
    b_comb = b_comb.at[0, :Cout].set(ba).at[1, :Cout].set(bc)
    b_comb = b_comb.at[2, :Cout].set(bb).at[3, :Cout].set(bd)
    b_comb = b_comb.reshape(1, 4 * G)

    x = jnp.transpose(x_nchw, (0, 2, 3, 1)).astype(jnp.bfloat16)   # NHWC, bf16
    xp = jnp.pad(x, ((0, 0), (1, 1), (1, 1), (0, 0)))              # master pad

    TH = block_h if block_h is not None else _pick_block_h(H, W, G)
    assert H % TH == 0, (H, TH)
    HT = H // TH

    in_specs = [
        # Full padded image per batch element; constant over the row-tile axis.
        pl.BlockSpec((1, H + 2, W + 2, Cin), lambda n, t: (n, 0, 0, 0)),
        pl.BlockSpec(w_comb.shape, lambda n, t: (0, 0, 0, 0)),
        pl.BlockSpec(b_comb.shape, lambda n, t: (0, 0)),
    ]
    out_specs = pl.BlockSpec((1, TH, W, 4 * G), lambda n, t: (n, t, 0, 0))
    out_shape = jax.ShapeDtypeStruct((N, H, W, 4 * G), jnp.float32)

    o = pl.pallas_call(
        _unpool_kernel,
        out_shape=out_shape,
        grid_spec=pltpu.PrefetchScalarGridSpec(
            num_scalar_prefetch=0,
            grid=(N, HT),
            in_specs=in_specs,
            out_specs=out_specs,
        ),
        compiler_params=pltpu.CompilerParams(
            dimension_semantics=("parallel", "parallel"),
            vmem_limit_bytes=48 * 1024 * 1024,
        ),
    )(xp, w_comb, b_comb)

    # Interleave glue: o[n, i, j, g*G + c] with g = p*2 + q  ->  y[n, c, 2i+p, 2j+q]
    o = o.reshape(N, H, W, 4, G)[..., :Cout]         # drop alignment padding
    o = o.reshape(N, H, W, 2, 2, Cout)               # [n, i, j, p, q, c]
    y = jnp.transpose(o, (0, 5, 1, 3, 2, 4))         # [n, c, i, p, j, q]
    return y.reshape(N, Cout, 2 * H, 2 * W)          # NCHW, matches PyTorch output
    # TODO(synk): offer an NHWC in/out variant to skip both layout transposes when
    # this layer is stacked inside an NHWC decoder.


def _reference(x_nchw, params):
    """Pure-JAX reference mirroring the PyTorch forward (for validation)."""
    wa, ba, wb, bb, wc, bc, wd, bd = params

    def conv(x, w, bias, pad_hw):
        w_oihw = jnp.transpose(w, (3, 2, 0, 1))
        out = lax.conv_general_dilated(
            x, w_oihw, window_strides=(1, 1), padding=pad_hw,
            dimension_numbers=('NCHW', 'OIHW', 'NCHW'),
            precision=lax.Precision.HIGHEST)
        return out + bias.reshape(1, -1, 1, 1)

    a = conv(x_nchw, wa, ba, ((1, 1), (1, 1)))
    b = conv(x_nchw, wb, bb, ((0, 1), (1, 1)))
    c = conv(x_nchw, wc, bc, ((1, 1), (0, 1)))
    d = conv(x_nchw, wd, bd, ((0, 1), (0, 1)))
    N, C, H, W = a.shape
    top = jnp.stack([a, c], axis=4)        # (N, C, H, W, 2)
    bot = jnp.stack([b, d], axis=4)
    y = jnp.stack([top, bot], axis=3)      # (N, C, H, 2, W, 2)
    return y.reshape(N, C, 2 * H, 2 * W)


def _init_params(key, inplanes, planes):
    ks = jax.random.split(key, 8)
    def w(k, kh, kw):
        return 0.1 * jax.random.normal(k, (kh, kw, inplanes, planes), jnp.float32)
    def bias(k):
        return 0.1 * jax.random.normal(k, (planes,), jnp.float32)
    # conv_A 3x3, conv_B 2x3, conv_C 3x2, conv_D 2x2 (same shapes as nn.Conv2d)
    return (w(ks[0], 3, 3), bias(ks[1]),
            w(ks[2], 2, 3), bias(ks[3]),
            w(ks[4], 3, 2), bias(ks[5]),
            w(ks[6], 2, 2), bias(ks[7]))


if __name__ == "__main__":
    key = jax.random.PRNGKey(0)
    k_x, k_p = jax.random.split(key)

    N, inplanes, planes, H, W = 2, 4, 6, 16, 16
    x = jax.random.normal(k_x, (N, inplanes, H, W), jnp.float32)
    params = _init_params(k_p, inplanes, planes)

    y = jax.block_until_ready(jax.jit(unpooling_as_convolution)(x, params))
    assert y.shape == (N, planes, 2 * H, 2 * W), y.shape

    # Validate against the pure-JAX reference evaluated on bf16-rounded
    # activations/weights (the kernel feeds bf16 to the MXU with exact f32
    # accumulation, so this comparison is tight).
    xq = x.astype(jnp.bfloat16).astype(jnp.float32)
    params_q = tuple(
        p.astype(jnp.bfloat16).astype(jnp.float32) if p.ndim == 4 else p
        for p in params)
    y_ref = jax.block_until_ready(_reference(xq, params_q))
    assert jnp.allclose(y, y_ref, rtol=2e-3, atol=2e-3), \
        float(jnp.max(jnp.abs(y - y_ref)))

    print("KERNEL_OK")
</pallas_src>

<mosaic_0001>
module attributes {stable_mosaic.version = 11 : i64} {
  func.func @_unpool_kernel(%arg0: i32, %arg1: i32, %arg2: memref<1x18x18x4xbf16, #tpu.memory_space<vmem>>, %arg3: memref<3x3x4x128xbf16, #tpu.memory_space<vmem>>, %arg4: memref<1x128xf32, #tpu.memory_space<vmem>>, %arg5: memref<1x8x16x128xf32, #tpu.memory_space<vmem>>) attributes {dimension_semantics = [#tpu.dimension_semantics<parallel>, #tpu.dimension_semantics<parallel>], iteration_bounds = array<i64: 2, 2>, scalar_prefetch = 0 : i64, scratch_operands = 0 : i64, tpu.core_type = #tpu.core_type<tc>, window_params = [{transform_indices = @transform_0, window_bounds = array<i64: 1, 18, 18, 4>}, {pipeline_mode = #tpu.pipeline_mode<synchronous>, transform_indices = @transform_1, window_bounds = array<i64: 3, 3, 4, 128>}, {pipeline_mode = #tpu.pipeline_mode<synchronous>, transform_indices = @transform_2, window_bounds = array<i64: 1, 128>}, {transform_indices = @transform_3, window_bounds = array<i64: 1, 8, 16, 128>}]} {
    %c8_i32 = arith.constant 8 : i32
    %0 = arith.muli %arg1, %c8_i32 : i32
    %1 = tpu.assume_multiple %0, 8 : i32
    %c0 = arith.constant 0 : index
    %2 = arith.index_cast %1 : i32 to index
    %c0_0 = arith.constant 0 : index
    %c0_1 = arith.constant 0 : index
    %3 = vector.load %arg2[%c0, %2, %c0_0, %c0_1] : memref<1x18x18x4xbf16, #tpu.memory_space<vmem>>, vector<1x10x18x4xbf16>
    %4 = vector.shape_cast %3 : vector<1x10x18x4xbf16> to vector<10x18x4xbf16>
    %5 = vector.extract_strided_slice %4 {offsets = [0, 0, 0], sizes = [10, 16, 4], strides = [1, 1, 1]} : vector<10x18x4xbf16> to vector<10x16x4xbf16>
    %6 = vector.shape_cast %5 : vector<10x16x4xbf16> to vector<160x4xbf16>
    %7 = vector.extract_strided_slice %4 {offsets = [0, 1, 0], sizes = [10, 16, 4], strides = [1, 1, 1]} : vector<10x18x4xbf16> to vector<10x16x4xbf16>
    %8 = vector.shape_cast %7 : vector<10x16x4xbf16> to vector<160x4xbf16>
    %9 = vector.extract_strided_slice %4 {offsets = [0, 2, 0], sizes = [10, 16, 4], strides = [1, 1, 1]} : vector<10x18x4xbf16> to vector<10x16x4xbf16>
    %10 = vector.shape_cast %9 : vector<10x16x4xbf16> to vector<160x4xbf16>
    %11 = vector.extract_strided_slice %6 {offsets = [0, 0], sizes = [128, 4], strides = [1, 1]} : vector<160x4xbf16> to vector<128x4xbf16>
    %c0_2 = arith.constant 0 : index
    %c0_3 = arith.constant 0 : index
    %c0_4 = arith.constant 0 : index
    %c0_5 = arith.constant 0 : index
    %12 = vector.load %arg3[%c0_2, %c0_3, %c0_4, %c0_5] : memref<3x3x4x128xbf16, #tpu.memory_space<vmem>>, vector<1x1x4x128xbf16>
    %13 = vector.shape_cast %12 : vector<1x1x4x128xbf16> to vector<4x128xbf16>
    %cst = arith.constant dense<0.000000e+00> : vector<128x128xf32>
    %14 = tpu.matmul %11, %13, %cst {dimension_numbers = #tpu.dot_dimension_numbers<[1], [0], [0], [1], [0, 0, 1, 1], [], []>} : vector<128x4xbf16>, vector<4x128xbf16>, vector<128x128xf32> -> vector<128x128xf32>
    %15 = vector.extract_strided_slice %8 {offsets = [0, 0], sizes = [128, 4], strides = [1, 1]} : vector<160x4xbf16> to vector<128x4xbf16>
    %c0_6 = arith.constant 0 : index
    %c1 = arith.constant 1 : index
    %c0_7 = arith.constant 0 : index
    %c0_8 = arith.constant 0 : index
    %16 = vector.load %arg3[%c0_6, %c1, %c0_7, %c0_8] : memref<3x3x4x128xbf16, #tpu.memory_space<vmem>>, vector<1x1x4x128xbf16>
    %17 = vector.shape_cast %16 : vector<1x1x4x128xbf16> to vector<4x128xbf16>
    %cst_9 = arith.constant dense<0.000000e+00> : vector<128x128xf32>
    %18 = tpu.matmul %15, %17, %cst_9 {dimension_numbers = #tpu.dot_dimension_numbers<[1], [0], [0], [1], [0, 0, 1, 1], [], []>} : vector<128x4xbf16>, vector<4x128xbf16>, vector<128x128xf32> -> vector<128x128xf32>
    %19 = arith.addf %14, %18 : vector<128x128xf32>
    %20 = vector.extract_strided_slice %10 {offsets = [0, 0], sizes = [128, 4], strides = [1, 1]} : vector<160x4xbf16> to vector<128x4xbf16>
    %c0_10 = arith.constant 0 : index
    %c2 = arith.constant 2 : index
    %c0_11 = arith.constant 0 : index
    %c0_12 = arith.constant 0 : index
    %21 = vector.load %arg3[%c0_10, %c2, %c0_11, %c0_12] : memref<3x3x4x128xbf16, #tpu.memory_space<vmem>>, vector<1x1x4x128xbf16>
    %22 = vector.shape_cast %21 : vector<1x1x4x128xbf16> to vector<4x128xbf16>
    %cst_13 = arith.constant dense<0.000000e+00> : vector<128x128xf32>
    %23 = tpu.matmul %20, %22, %cst_13 {dimension_numbers = #tpu.dot_dimension_numbers<[1], [0], [0], [1], [0, 0, 1, 1], [], []>} : vector<128x4xbf16>, vector<4x128xbf16>, vector<128x128xf32> -> vector<128x128xf32>
    %24 = arith.addf %19, %23 : vector<128x128xf32>
    %25 = vector.extract_strided_slice %6 {offsets = [16, 0], sizes = [128, 4], strides = [1, 1]} : vector<160x4xbf16> to vector<128x4xbf16>
    %c1_14 = arith.constant 1 : index
    %c0_15 = arith.constant 0 : index
    %c0_16 = arith.constant 0 : index
    %c0_17 = arith.constant 0 : index
    %26 = vector.load %arg3[%c1_14, %c0_15, %c0_16, %c0_17] : memref<3x3x4x128xbf16, #tpu.memory_space<vmem>>, vector<1x1x4x128xbf16>
    %27 = vector.shape_cast %26 : vector<1x1x4x128xbf16> to vector<4x128xbf16>
    %cst_18 = arith.constant dense<0.000000e+00> : vector<128x128xf32>
    %28 = tpu.matmul %25, %27, %cst_18 {dimension_numbers = #tpu.dot_dimension_numbers<[1], [0], [0], [1], [0, 0, 1, 1], [], []>} : vector<128x4xbf16>, vector<4x128xbf16>, vector<128x128xf32> -> vector<128x128xf32>
    %29 = arith.addf %24, %28 : vector<128x128xf32>
    %30 = vector.extract_strided_slice %8 {offsets = [16, 0], sizes = [128, 4], strides = [1, 1]} : vector<160x4xbf16> to vector<128x4xbf16>
    %c1_19 = arith.constant 1 : index
    %c1_20 = arith.constant 1 : index
    %c0_21 = arith.constant 0 : index
    %c0_22 = arith.constant 0 : index
    %31 = vector.load %arg3[%c1_19, %c1_20, %c0_21, %c0_22] : memref<3x3x4x128xbf16, #tpu.memory_space<vmem>>, vector<1x1x4x128xbf16>
    %32 = vector.shape_cast %31 : vector<1x1x4x128xbf16> to vector<4x128xbf16>
    %cst_23 = arith.constant dense<0.000000e+00> : vector<128x128xf32>
    %33 = tpu.matmul %30, %32, %cst_23 {dimension_numbers = #tpu.dot_dimension_numbers<[1], [0], [0], [1], [0, 0, 1, 1], [], []>} : vector<128x4xbf16>, vector<4x128xbf16>, vector<128x128xf32> -> vector<128x128xf32>
    %34 = arith.addf %29, %33 : vector<128x128xf32>
    %35 = vector.extract_strided_slice %10 {offsets = [16, 0], sizes = [128, 4], strides = [1, 1]} : vector<160x4xbf16> to vector<128x4xbf16>
    %c1_24 = arith.constant 1 : index
    %c2_25 = arith.constant 2 : index
    %c0_26 = arith.constant 0 : index
    %c0_27 = arith.constant 0 : index
    %36 = vector.load %arg3[%c1_24, %c2_25, %c0_26, %c0_27] : memref<3x3x4x128xbf16, #tpu.memory_space<vmem>>, vector<1x1x4x128xbf16>
    %37 = vector.shape_cast %36 : vector<1x1x4x128xbf16> to vector<4x128xbf16>
    %cst_28 = arith.constant dense<0.000000e+00> : vector<128x128xf32>
    %38 = tpu.matmul %35, %37, %cst_28 {dimension_numbers = #tpu.dot_dimension_numbers<[1], [0], [0], [1], [0, 0, 1, 1], [], []>} : vector<128x4xbf16>, vector<4x128xbf16>, vector<128x128xf32> -> vector<128x128xf32>
    %39 = arith.addf %34, %38 : vector<128x128xf32>
    %40 = vector.extract_strided_slice %6 {offsets = [32, 0], sizes = [128, 4], strides = [1, 1]} : vector<160x4xbf16> to vector<128x4xbf16>
    %c2_29 = arith.constant 2 : index
    %c0_30 = arith.constant 0 : index
    %c0_31 = arith.constant 0 : index
    %c0_32 = arith.constant 0 : index
    %41 = vector.load %arg3[%c2_29, %c0_30, %c0_31, %c0_32] : memref<3x3x4x128xbf16, #tpu.memory_space<vmem>>, vector<1x1x4x128xbf16>
    %42 = vector.shape_cast %41 : vector<1x1x4x128xbf16> to vector<4x128xbf16>
    %cst_33 = arith.constant dense<0.000000e+00> : vector<128x128xf32>
    %43 = tpu.matmul %40, %42, %cst_33 {dimension_numbers = #tpu.dot_dimension_numbers<[1], [0], [0], [1], [0, 0, 1, 1], [], []>} : vector<128x4xbf16>, vector<4x128xbf16>, vector<128x128xf32> -> vector<128x128xf32>
    %44 = arith.addf %39, %43 : vector<128x128xf32>
    %45 = vector.extract_strided_slice %8 {offsets = [32, 0], sizes = [128, 4], strides = [1, 1]} : vector<160x4xbf16> to vector<128x4xbf16>
    %c2_34 = arith.constant 2 : index
    %c1_35 = arith.constant 1 : index
    %c0_36 = arith.constant 0 : index
    %c0_37 = arith.constant 0 : index
    %46 = vector.load %arg3[%c2_34, %c1_35, %c0_36, %c0_37] : memref<3x3x4x128xbf16, #tpu.memory_space<vmem>>, vector<1x1x4x128xbf16>
    %47 = vector.shape_cast %46 : vector<1x1x4x128xbf16> to vector<4x128xbf16>
    %cst_38 = arith.constant dense<0.000000e+00> : vector<128x128xf32>
    %48 = tpu.matmul %45, %47, %cst_38 {dimension_numbers = #tpu.dot_dimension_numbers<[1], [0], [0], [1], [0, 0, 1, 1], [], []>} : vector<128x4xbf16>, vector<4x128xbf16>, vector<128x128xf32> -> vector<128x128xf32>
    %49 = arith.addf %44, %48 : vector<128x128xf32>
    %50 = vector.extract_strided_slice %10 {offsets = [32, 0], sizes = [128, 4], strides = [1, 1]} : vector<160x4xbf16> to vector<128x4xbf16>
    %c2_39 = arith.constant 2 : index
    %c2_40 = arith.constant 2 : index
    %c0_41 = arith.constant 0 : index
    %c0_42 = arith.constant 0 : index
    %51 = vector.load %arg3[%c2_39, %c2_40, %c0_41, %c0_42] : memref<3x3x4x128xbf16, #tpu.memory_space<vmem>>, vector<1x1x4x128xbf16>
    %52 = vector.shape_cast %51 : vector<1x1x4x128xbf16> to vector<4x128xbf16>
    %cst_43 = arith.constant dense<0.000000e+00> : vector<128x128xf32>
    %53 = tpu.matmul %50, %52, %cst_43 {dimension_numbers = #tpu.dot_dimension_numbers<[1], [0], [0], [1], [0, 0, 1, 1], [], []>} : vector<128x4xbf16>, vector<4x128xbf16>, vector<128x128xf32> -> vector<128x128xf32>
    %54 = arith.addf %49, %53 : vector<128x128xf32>
    %c0_44 = arith.constant 0 : index
    %c0_45 = arith.constant 0 : index
    %55 = vector.load %arg4[%c0_44, %c0_45] : memref<1x128xf32, #tpu.memory_space<vmem>>, vector<1x128xf32>
    %56 = vector.broadcast %55 : vector<1x128xf32> to vector<128x128xf32>
    %57 = arith.addf %54, %56 : vector<128x128xf32>
    %58 = vector.shape_cast %57 : vector<128x128xf32> to vector<8x16x128xf32>
    %c0_46 = arith.constant 0 : index
    %c0_47 = arith.constant 0 : index
    %c0_48 = arith.constant 0 : index
    %c0_49 = arith.constant 0 : index
    %59 = vector.load %arg5[%c0_46, %c0_47, %c0_48, %c0_49] : memref<1x8x16x128xf32, #tpu.memory_space<vmem>>, vector<1x8x16x128xf32>
    %60 = vector.shape_cast %59 : vector<1x8x16x128xf32> to vector<8x16x128xf32>
    %61 = vector.shape_cast %58 : vector<8x16x128xf32> to vector<1x8x16x128xf32>
    tpu.vector_store %arg5[%c0_46, %c0_47, %c0_48, %c0_49], %61 {strides = array<i32>} : memref<1x8x16x128xf32, #tpu.memory_space<vmem>>, vector<1x8x16x128xf32>,
    return
  }
  func.func @transform_0(%arg0: i32, %arg1: i32) -> (i32, i32, i32, i32) {
    %c0_i32 = arith.constant 0 : i32
    %c0_i32_0 = arith.constant 0 : i32
    %c0_i32_1 = arith.constant 0 : i32
    %c0_i32_2 = arith.constant 0 : i32
    return %arg0, %c0_i32, %c0_i32_0, %c0_i32_1 : i32, i32, i32, i32
  }
  func.func @transform_1(%arg0: i32, %arg1: i32) -> (i32, i32, i32, i32) {
    %c0_i32 = arith.constant 0 : i32
    %c0_i32_0 = arith.constant 0 : i32
    %c0_i32_1 = arith.constant 0 : i32
    %c0_i32_2 = arith.constant 0 : i32
    %c0_i32_3 = arith.constant 0 : i32
    return %c0_i32, %c0_i32_0, %c0_i32_1, %c0_i32_2 : i32, i32, i32, i32
  }
  func.func @transform_2(%arg0: i32, %arg1: i32) -> (i32, i32) {
    %c0_i32 = arith.constant 0 : i32
    %c0_i32_0 = arith.constant 0 : i32
    %c0_i32_1 = arith.constant 0 : i32
    return %c0_i32, %c0_i32_0 : i32, i32
  }
  func.func @transform_3(%arg0: i32, %arg1: i32) -> (i32, i32, i32, i32) {
    %c0_i32 = arith.constant 0 : i32
    %c0_i32_0 = arith.constant 0 : i32
    %c0_i32_1 = arith.constant 0 : i32
    return %arg0, %arg1, %c0_i32, %c0_i32_0 : i32, i32, i32, i32
  }
}

</mosaic_0001>

<bundles_post_ra>
// kernel: unpooling_as_convolution.1
= control target key start
LH: loop header
LB: loop body
LE: loop exit
PB: predicated region body
PF: predicated region fallthrough
CT: control target
= control target key end

     0   :  { %s2422_s12 = smov 0   ;;  %s2424_s13 = smov 0   ;;  %s3257_s0 = inlined_call_operand.vmem [shape: bf16[2,18,18,4], index: 0, kind: input, shape index: {}]   ;;  %s3258_s1 = inlined_call_operand.vmem [shape: bf16[3,3,4,128], index: 1, kind: input, shape index: {}]   ;;  %s3259_s2 = inlined_call_operand.vmem [shape: f32[1,128], index: 2, kind: input, shape index: {}]   ;;  %s3260_s3 = inlined_call_operand.vmem [shape: f32[2,16,16,128], index: 3, kind: output, shape index: {}]  }
   0x1   :  { %s2426_s14 = smov 0   ;;  %s2428_s15 = smov 0  }
   0x2   :  { %s2430_s16 = smov 0  }
   0x3 LB: > { %s22_s17 = sadd.s32 1, %s2392_s14  ;;  %s25_s18 = sadd.s32 1, %s2396_s15  ;;  %s2400_s16 = sphi %s2430_s16, %s13_s16   ;;  %s2396_s15 = sphi %s2428_s15, %s3308_s15   ;;  %s2392_s14 = sphi %s2426_s14, %s3307_s14   ;;  %s2388_s13 = sphi %s2424_s13, %s3306_s13   ;;  %s2384_s12 = sphi %s2422_s12, %s3305_s12  }
   0x4   : > { %p23_p0 = scmp.ge.s32.totalorder %s22_s17, 2  ;;  %p1923_p1 = scmp.ge.s32.totalorder %s2400_s16, 1 }
   0x5   : > { %p151_p2 = scmp.lt.s32.totalorder %s2400_s16, 5 }
   0x6   : > { %s3310_s17 = smov (%p23_p0, %s22_s17), 0  ;;  %s3312_s18 = smov (!%p23_p0, %s25_s18), %s2396_s15 }
   0x7   : > { %p152_p3 = pnand %p1923_p1, %p151_p2  ;;  %p27_p4 = scmp.ge.s32.totalorder %s3312_s18, 2 }
   0x9   : > { %s3314_s18 = smov (%p27_p4, %s3312_s18), 0  ;;  %155 = sbr.rel (%p152_p3) target bundleno = 396 (0x18c), region = 32 }
   0xe   : > { %v1942_v0 = vld [vmem:[%s3258_s1 + $0x2] sm:$0x3]  ;;  %vm629_vm0 = vcmask 1041408   ;;  %p180_p5 = scmp.lt.s32.totalorder %s2388_s13, 1  ;;  %v577_v2 = vld [vmem:[%s3258_s1] sm:$0x3] }
   0xf   : > { %2302 = vmatprep.subr.msk.bf16.mxu1 %vm629_vm0, %v1942_v0  ;;  %2301 = vmatprep.subr.msk.bf16.mxu0 %vm629_vm0, %v1942_v0  ;;  %v631_v1 = vsel %vm629_vm0, %v1942_v0, 0  ;;  %v1975_v3 = vld [vmem:[%s3258_s1 + $0x4] sm:$0x3]  ;;  %s2055_s25 = smul.u32 96, %s2384_s12  ;;  %vm231_vm1 = vsmask.f32 3328 }
  0x10   : > { %2300 = vmatpush3.bf16.msra.mxu1 %v631_v1  ;;  %2138 = vmatpush3.bf16.msra.mxu0 %v631_v1  ;;  %s3316_s13 = smov (!%p180_p5, %s2388_s13), 1  ;;  %vm232_vm2 = vsmask.f32 7440  ;;  %vm604_vm3 = vcmask 31744   ;;  %v2501_v15 = vsel %vm629_vm0, %v577_v2, 0  ;;  %v2521_v34 = vsel %vm629_vm0, %v1975_v3, 0 }
  0x11   : > { %2303 = vmatprep.subr.msk.bf16.mxu1 %vm629_vm0, %v577_v2  ;;  %2304 = vmatprep.subr.msk.bf16.mxu0 %vm629_vm0, %v1975_v3  ;;  %s2311_s26 = smul.u32 216, %s3316_s13  ;;  %vm2516_vm4 = vmor %vm231_vm1, %vm232_vm2  ;;  %vm504_vm5 = vcmask 1042432   ;;  %vm505_vm6 = vcmask 1046532   ;;  %s1925_s23 = sshll.u32 %s2384_s12, 3 }
  0x12   : > { %vm2664_vm7 = vmor %vm504_vm5, %vm505_vm6  ;;  %p188_p6 = scmp.lt.s32.totalorder %s1925_s23, 15  ;;  %s1927_s24 = sshll.u32 %s3316_s13, 5 }
  0x13   : > { %s184_s29 = scalar_lea.vmem %s3257_s0, %s2311_s26 }
  0x14   : > { %s2475_s30 = scalar_lea.vmem %s184_s29, %s2055_s25  ;;  %s3318_s23 = smov (!%p188_p6, %s1925_s23), 15 }
  0x15   : > { %v2478_v4 = vld [vmem:[%s2475_s30] sm:$0xf]  ;;  %v2481_v5 = vld [vmem:[%s2475_s30 + $0x4] sm:$0xf]  ;;  %v2484_v6 = vld [vmem:[%s2475_s30 + $0x8] sm:$0x1] }
  0x16   : > { %v235_v7 = vshrl.u32 %v2478_v4, 16  ;;  %v238_v8 = vshll.u32 %v2478_v4, 16  ;;  %v244_v9 = vshll.u32 %v2481_v5, 16  ;;  %v248_v10 = vshrl.u32 %v2481_v5, 16  ;;  %v2491_v11 = vld [vmem:[%s2475_s30 + $0x30] sm:$0xf] }
  0x17   : > { %v254_v12 = vshll.u32 %v2484_v6, 16  ;;  %v2495_v13 = vld [vmem:[%s2475_s30 + $0x34] sm:$0xf]  ;;  %v2498_v14 = vld [vmem:[%s2475_s30 + $0x38] sm:$0x1]  ;;  %v331_v21 = vshrl.u32 %v2491_v11, 16 }
  0x18   : > { %v237_v16 = vrot.slane %v235_v7, 4  ;;  %v240_v17 = vrot.slane %v238_v8, 5  ;;  %v246_v18 = vrot.slane %v244_v9, 5  ;;  %v250_v19 = vrot.slane %v248_v10, 4  ;;  %v2509_v28 = vld [vmem:[%s2475_s30 + $0xc] sm:$0xf] }
  0x19   : > { %v256_v20 = vrot.slane %v254_v12, 5  ;;  %v334_v22 = vshll.u32 %v2491_v11, 16  ;;  %v340_v23 = vshll.u32 %v2495_v13, 16  ;;  %v344_v26 = vshrl.u32 %v2495_v13, 16  ;;  %v2512_v29 = vld [vmem:[%s2475_s30 + $0x10] sm:$0xf] }
  0x1a   : > { %v241_v24 = vor.u32 %v240_v17, %v237_v16  ;;  %v251_v25 = vor.u32 %v250_v19, %v246_v18  ;;  %v350_v27 = vshll.u32 %v2498_v14, 16  ;;  %v333_v31 = vrot.slane %v331_v21, 4  ;;  %v2524_v40 = vld [vmem:[%s2475_s30 + $0x14] sm:$0x1]  ;;  %v2535_v52 = vld [vmem:[%s2475_s30 + $0x3c] sm:$0xf] }
  0x1b   : > { %v336_v32 = vrot.slane %v334_v22, 5  ;;  %v342_v33 = vrot.slane %v340_v23, 5  ;;  %v346_v37 = vrot.slane %v344_v26, 4  ;;  %v259_v41 = vshrl.u32 %v2509_v28, 16  ;;  %v2539_v57 = vld [vmem:[%s2475_s30 + $0x40] sm:$0xf] }
  0x1c   : > { %v242_v35 = vrot.slane %v241_v24, 4  ;;  %v252_v36 = vrot.slane %v251_v25, 4  ;;  %v352_v38 = vrot.slane %v350_v27, 5  ;;  %v262_v42 = vshll.u32 %v2509_v28, 16  ;;  %v2547_v62 = vld [vmem:[%s2475_s30 + $0x44] sm:$0x1] }
  0x1d   : > { %v337_v39 = vor.u32 %v336_v32, %v333_v31  ;;  %v268_v43 = vshll.u32 %v2512_v29, 16  ;;  %v347_v46 = vor.u32 %v346_v37, %v342_v33  ;;  %v272_v47 = vshrl.u32 %v2512_v29, 16  ;;  %v2553_v3 = vld [vmem:[%s2475_s30 + $0x18] sm:$0xf]  ;;  %v2562_v19 = vld [vmem:[%s2475_s30 + $0x1c] sm:$0xf] }
  0x1e   : > { %v247_v44 = vsel %vm2516_vm4, %v242_v35, %v246_v18  ;;  %v257_v45 = vsel %vm2516_vm4, %v252_v36, %v256_v20  ;;  %v261_v50 = vrot.slane %v259_v41, 4  ;;  %v264_v51 = vrot.slane %v262_v42, 5  ;;  %v2569_v23 = vld [vmem:[%s2475_s30 + $0x20] sm:$0x1]  ;;  %v2576_v32 = vld [vmem:[%s2475_s30 + $0x48] sm:$0xf] }
  0x1f   : > { %v1943_v48 = vcombine.low %v247_v44, %v257_v45  ;;  %v338_v49 = vrot.slane %v337_v39, 4  ;;  %v348_v53 = vrot.slane %v347_v46, 4  ;;  %v270_v54 = vrot.slane %v268_v43, 5  ;;  %v2589_v44 = vld [vmem:[%s2475_s30 + $0x4c] sm:$0xf]  ;;  %s1926_s12 = sshll.u32 %s3318_s23, 1 }
  0x20   : > { %v274_v55 = vrot.slane %v272_v47, 4  ;;  %v278_v56 = vshll.u32 %v2524_v40, 16  ;;  %v512_v58 = vrot.slane %v2484_v6, 5  ;;  %v265_v60 = vor.u32 %v264_v51, %v261_v50  ;;  %s192_s25 = sadd.s32 %s1927_s24, %s1926_s12 }
  0x21   : > { %2139 = vmatprep.mubr.msk.bf16.mxu0 %vm604_vm3, %v1943_v48  ;;  %v343_v59 = vsel %vm2516_vm4, %v338_v49, %v342_v33  ;;  %v516_v61 = vrot.slane %v2512_v29, 5  ;;  %v353_v63 = vsel %vm2516_vm4, %v348_v53, %v352_v38  ;;  %v355_v2 = vshrl.u32 %v2535_v52, 16  ;;  %v2584_v38 = vld [vmem:[%s3258_s1 + $0x8] sm:$0x3]  ;;  %s1928_s13 = sshll.u32 %s192_s25, 3 }
  0x22   : > { %v275_v0 = vor.u32 %v274_v55, %v270_v54  ;;  %v280_v1 = vrot.slane %v278_v56, 5  ;;  %v2555_v7 = vcombine.low %v343_v59, %v353_v63  ;;  %v266_v8 = vrot.slane %v265_v60, 4  ;;  %v2603_v63 = vld [vmem:[%s2475_s30 + $0x24] sm:$0xf] }
  0x23   : > { %v358_v9 = vshll.u32 %v2535_v52, 16  ;;  %v364_v10 = vshll.u32 %v2539_v57, 16  ;;  %v357_v16 = vrot.slane %v355_v2, 4  ;;  %v368_v17 = vshrl.u32 %v2539_v57, 16 }
  0x24   : > { %v276_v12 = vrot.slane %v275_v0, 4  ;;  %v374_v18 = vshll.u32 %v2547_v62, 16  ;;  %2147 = vmatprep.mubr.msk.bf16.mxu1 %vm604_vm3, %v2555_v7  ;;  %v271_v20 = vsel %vm2516_vm4, %v266_v8, %v270_v54  ;;  %v283_v24 = vshrl.u32 %v2553_v3, 16  ;;  %v2597_v54 = vld [vmem:[%s2475_s30 + $0x50] sm:$0x1] }
  0x25   : > { %v360_v21 = vrot.slane %v358_v9, 5  ;;  %v366_v22 = vrot.slane %v364_v10, 5  ;;  %v370_v26 = vrot.slane %v368_v17, 4  ;;  %v286_v31 = vshll.u32 %v2553_v3, 16  ;;  %v2611_v8 = vld [vmem:[%s2475_s30 + $0x28] sm:$0xf] }
  0x26   : > { %v281_v25 = vsel %vm2516_vm4, %v276_v12, %v280_v1  ;;  %v376_v27 = vrot.slane %v374_v18, 5  ;;  %v285_v36 = vrot.slane %v283_v24, 4  ;;  %v292_v37 = vshll.u32 %v2562_v19, 16  ;;  %v2619_v17 = vld [vmem:[%s3258_s1 + $0x6] sm:$0x3] }
  0x27   : > { %v2578_v33 = vcombine.low %v271_v20, %v281_v25  ;;  %v361_v35 = vor.u32 %v360_v21, %v357_v16  ;;  %v371_v39 = vor.u32 %v370_v26, %v366_v22  ;;  %v288_v41 = vrot.slane %v286_v31, 5 }
  0x28   : > { %v296_v42 = vshrl.u32 %v2562_v19, 16  ;;  %v302_v43 = vshll.u32 %v2569_v23, 16  ;;  %v294_v46 = vrot.slane %v292_v37, 5  ;;  %v379_v47 = vshrl.u32 %v2576_v32, 16 }
  0x29   : > { %2140 = vmatmul.mubr.msk.bf16.vlgmr.msra.gmra.mxu0 %vm604_vm3, %v2578_v33  ;;  %v362_v45 = vrot.slane %v361_v35, 4  ;;  %v382_v48 = vshll.u32 %v2576_v32, 16  ;;  %v372_v49 = vrot.slane %v371_v39, 4  ;;  %v289_v50 = vor.u32 %v288_v41, %v285_v36  ;;  %v2632_v35 = vld [vmem:[%s2475_s30 + $0x54] sm:$0xf] }
  0x2a   : > { %2174 = vmatpush3.bf16.msra.mxu0 %v2521_v34  ;;  %v298_v51 = vrot.slane %v296_v42, 4  ;;  %v304_v53 = vrot.slane %v302_v43, 5  ;;  %v381_v56 = vrot.slane %v379_v47, 4  ;;  %v388_v60 = vshll.u32 %v2589_v44, 16  ;;  %v2639_v42 = vld [vmem:[%s2475_s30 + $0x58] sm:$0xf] }
  0x2b   : > { %v367_v55 = vsel %vm2516_vm4, %v362_v45, %v366_v22  ;;  %v384_v59 = vrot.slane %v382_v48, 5  ;;  %2306 = vmatprep.subr.msk.bf16.mxu0 %vm629_vm0, %v2584_v38  ;;  %v377_v34 = vsel %vm2516_vm4, %v372_v49, %v376_v27  ;;  %v290_v0 = vrot.slane %v289_v50, 4  ;;  %v2624_v22 = vld [vmem:[%s2475_s30 + $0x2c] sm:$0x1] }
  0x2c   : > { %v299_v1 = vor.u32 %v298_v51, %v294_v46  ;;  %v392_v2 = vshrl.u32 %v2589_v44, 16  ;;  %v2613_v9 = vcombine.low %v367_v55, %v377_v34  ;;  %v390_v12 = vrot.slane %v388_v60, 5 }
  0x2d   : > { %v385_v10 = vor.u32 %v384_v59, %v381_v56  ;;  %v398_v16 = vshll.u32 %v2597_v54, 16  ;;  %v295_v18 = vsel %vm2516_vm4, %v290_v0, %v294_v46  ;;  %v307_v24 = vshrl.u32 %v2603_v63, 16 }
  0x2e   : > { %v300_v20 = vrot.slane %v299_v1, 4  ;;  %v394_v21 = vrot.slane %v392_v2, 4  ;;  %2148 = vmatmul.mubr.msk.bf16.vlgmr.msra.gmra.mxu1 %vm604_vm3, %v2613_v9  ;;  %v310_v27 = vshll.u32 %v2603_v63, 16  ;;  %v316_v31 = vshll.u32 %v2611_v8, 16 }
  0x2f   : > { %v386_v25 = vrot.slane %v385_v10, 4  ;;  %v400_v26 = vrot.slane %v398_v16, 5  ;;  %2156 = vmatpush3.bf16.msra.mxu1 %v2501_v15  ;;  %v309_v39 = vrot.slane %v307_v24, 4  ;;  %v320_v41 = vshrl.u32 %v2611_v8, 16  ;;  %v2042_v24 = vld [vmem:[%s3258_s1 + $0x10] sm:$0x3] }
  0x30   : > { %v305_v36 = vsel %vm2516_vm4, %v300_v20, %v304_v53  ;;  %v395_v37 = vor.u32 %v394_v21, %v390_v12  ;;  %v312_v46 = vrot.slane %v310_v27, 5  ;;  %v318_v47 = vrot.slane %v316_v31, 5  ;;  %2305 = vmatprep.subr.msk.bf16.mxu1 %vm629_vm0, %v2619_v17  ;;  %v2652_v53 = vld [vmem:[%s2475_s30 + $0x5c] sm:$0x1] }
  0x31   : > { %v2641_v43 = vcombine.low %v295_v18, %v305_v36  ;;  %v391_v45 = vsel %vm2516_vm4, %v386_v25, %v390_v12  ;;  %v322_v48 = vrot.slane %v320_v41, 4  ;;  %v326_v49 = vshll.u32 %v2624_v22, 16 }
  0x32   : > { %v396_v15 = vrot.slane %v395_v37, 4  ;;  %v403_v50 = vshrl.u32 %v2632_v35, 16  ;;  %v313_v51 = vor.u32 %v312_v46, %v309_v39  ;;  %v406_v55 = vshll.u32 %v2632_v35, 16 }
  0x33   : > { %2143 = vmatprep.mubr.msk.bf16.mxu0 %vm604_vm3, %v2641_v43  ;;  %v412_v56 = vshll.u32 %v2639_v42, 16  ;;  %v416_v59 = vshrl.u32 %v2639_v42, 16  ;;  %v323_v34 = vor.u32 %v322_v48, %v318_v47  ;;  %v328_v0 = vrot.slane %v326_v49, 5 }
  0x34   : > { %v401_v60 = vsel %vm2516_vm4, %v396_v15, %v400_v26  ;;  %v405_v1 = vrot.slane %v403_v50, 4  ;;  %v314_v10 = vrot.slane %v313_v51, 4  ;;  %v408_v12 = vrot.slane %v406_v55, 5 }
  0x35   : > { %v2659_v2 = vcombine.low %v391_v45, %v401_v60  ;;  %v414_v16 = vrot.slane %v412_v56, 5  ;;  %v324_v18 = vrot.slane %v323_v34, 4  ;;  %v418_v20 = vrot.slane %v416_v59, 4 }
  0x36   : > { %v422_v21 = vshll.u32 %v2652_v53, 16  ;;  %v1932_v25 = vrot.slane %v2478_v4, 9  ;;  %v519_v26 = vrot.slane %v2524_v40, 5  ;;  %v319_v27 = vsel %vm2516_vm4, %v314_v10, %v318_v47 }
  0x37   : > { %2151 = vmatprep.mubr.msk.bf16.mxu1 %vm604_vm3, %v2659_v2  ;;  %v409_v31 = vor.u32 %v408_v12, %v405_v1  ;;  %v509_v36 = vrot.slane %v2481_v5, 5  ;;  %v329_v37 = vsel %vm2516_vm4, %v324_v18, %v328_v0  ;;  %v419_v39 = vor.u32 %v418_v20, %v414_v16 }
  0x38   : > { %v424_v41 = vrot.slane %v422_v21, 5  ;;  %v1933_v45 = vrot.slane %v2509_v28, 9  ;;  %v2678_v46 = vcombine.low %v319_v27, %v329_v37  ;;  %v1959_v47 = vcombine.low %v2478_v4, %v2481_v5 }
  0x39   : > { %v410_v15 = vrot.slane %v409_v31, 4  ;;  %v510_v40 = vsel %vm2664_vm7, %v1932_v25, %v509_v36  ;;  %v511_v48 = vrot.slane %v509_v36, 4  ;;  %v420_v49 = vrot.slane %v419_v39, 4 }
  0x3a   : > { %v517_v50 = vsel %vm2664_vm7, %v1933_v45, %v516_v61  ;;  %v518_v51 = vrot.slane %v516_v61, 4  ;;  %2144 = vmatmul.mubr.msk.bf16.gmra.mxu0 %vm604_vm3, %v2678_v46  ;;  %v1934_v4 = vrot.slane %v2553_v3, 9  ;;  %v523_v5 = vrot.slane %v2562_v19, 5 }
  0x3b   : > { %v415_v55 = vsel %vm2516_vm4, %v410_v15, %v414_v16  ;;  %v513_v56 = vsel %vm2664_vm7, %v511_v48, %v512_v58  ;;  %v425_v59 = vsel %vm2516_vm4, %v420_v49, %v424_v41  ;;  %v526_v34 = vrot.slane %v2569_v23, 5  ;;  %v2770_v15 = vld [vmem:[%s2475_s30 + $0x64] sm:$0xf] }
  0x3c   : > { %v1976_v60 = vcombine.low %v510_v40, %v513_v56  ;;  %v520_v61 = vsel %vm2664_vm7, %v518_v51, %v519_v26  ;;  %v2705_v0 = vcombine.low %v415_v55, %v425_v59  ;;  %v524_v6 = vsel %vm2664_vm7, %v1934_v4, %v523_v5  ;;  %v2786_v51 = vld [vmem:[%s3258_s1 + $0xa] sm:$0x3] }
  0x3d   : > { %v525_v1 = vrot.slane %v523_v5, 4  ;;  %v2710_v58 = vcombine.low %v517_v50, %v520_v61  ;;  %v530_v10 = vrot.slane %v2611_v8, 5  ;;  %v1935_v23 = vrot.slane %v2603_v63, 9 }
  0x3e   : > { %2175 = vmatprep.mubr.msk.bf16.mxu0 %vm604_vm3, %v1976_v60  ;;  %2152 = vmatmul.mubr.msk.bf16.gmra.mxu1 %vm604_vm3, %v2705_v0  ;;  %v533_v16 = vrot.slane %v2624_v22, 5  ;;  %v537_v18 = vrot.slane %v2495_v13, 5  ;;  %v540_v20 = vrot.slane %v2498_v14, 5  ;;  %v1936_v26 = vrot.slane %v2491_v11, 9  ;;  %v227_v60 = vld [vmem:[%s2475_s30 + $0x68] sm:$0x1] }
  0x3f   : > { %v527_v12 = vsel %vm2664_vm7, %v525_v1, %v526_v34  ;;  %2157 = vmatprep.mubr.msk.bf16.mxu1 %vm604_vm3, %v1959_v47  ;;  %v532_v25 = vrot.slane %v530_v10, 4  ;;  %v1177_v27 = vsel %vm629_vm0, %v2584_v38, 0  ;;  %v1937_v36 = vrot.slane %v2535_v52, 9  ;;  %v2743_v38 = vld [vmem:[%s3258_s1 + $0xc] sm:$0x3] }
  0x40   : > { %v2722_v21 = vcombine.low %v524_v6, %v527_v12  ;;  %v539_v31 = vrot.slane %v537_v18, 4  ;;  %v544_v22 = vrot.slane %v2539_v57, 5  ;;  %v2731_v37 = vcombine.low %v2509_v28, %v2512_v29 }
  0x41   : > { %v1053_v14 = vsel %vm629_vm0, %v2619_v17, 0  ;;  %v2737_v39 = vcombine.low %v2553_v3, %v2562_v19  ;;  %v547_v41 = vrot.slane %v2547_v62, 5  ;;  %v2749_v28 = vcombine.low %v2603_v63, %v2611_v8  ;;  %v2756_v62 = vld [vmem:[%s2475_s30 + $0x60] sm:$0xf] }
  0x42   : > { %2176 = vmatmul.mubr.msk.bf16.vlgmr.msra.gmra.mxu0 %vm604_vm3, %v2710_v58  ;;  %v531_v29 = vsel %vm2664_vm7, %v1935_v23, %v530_v10  ;;  %v534_v3 = vsel %vm2664_vm7, %v532_v25, %v533_v16  ;;  %v546_v19 = vrot.slane %v544_v22, 4  ;;  %v2762_v17 = vcombine.low %v2491_v11, %v2495_v13  ;;  %v2813_v25 = vld [vmem:[%s2475_s30 + $0x6c] sm:$0xf] }
  0x43   : > { %2210 = vmatpush3.bf16.msra.mxu0 %v1177_v27  ;;  %2179 = vmatprep.mubr.msk.bf16.mxu0 %vm604_vm3, %v2722_v21  ;;  %v538_v63 = vsel %vm2664_vm7, %v1936_v26, %v537_v18  ;;  %v541_v8 = vsel %vm2664_vm7, %v539_v31, %v540_v20  ;;  %v551_v45 = vrot.slane %v2589_v44, 5  ;;  %v545_v40 = vsel %vm2664_vm7, %v1937_v36, %v544_v22  ;;  %v2819_v36 = vld [vmem:[%s2475_s30 + $0x70] sm:$0xf] }
  0x44   : > { %v548_v48 = vsel %vm2664_vm7, %v546_v19, %v547_v41  ;;  %v1938_v11 = vrot.slane %v2576_v32, 9  ;;  %v558_v13 = vrot.slane %v2639_v42, 5  ;;  %2308 = vmatprep.subr.msk.bf16.mxu0 %vm629_vm0, %v2743_v38  ;;  %v2780_v49 = vcombine.low %v531_v29, %v534_v3  ;;  %v230_v19 = vld [vmem:[%s2475_s30 + $0x74] sm:$0x1]  ;;  %s3162_s30 = scalar_lea.vmem %s3260_s3, %s1928_s13 }
  0x45   : > { %v553_v47 = vrot.slane %v551_v45, 4  ;;  %v554_v50 = vrot.slane %v2597_v54, 5  ;;  %v427_v55 = vshrl.u32 %v2756_v62, 16  ;;  %v2791_v56 = vcombine.low %v538_v63, %v541_v8 }
  0x46   : > { %2158 = vmatmul.mubr.msk.bf16.vlgmr.msra.gmra.mxu1 %vm604_vm3, %v2731_v37  ;;  %v1939_v4 = vrot.slane %v2632_v35, 9  ;;  %v430_v5 = vshll.u32 %v2756_v62, 16  ;;  %v440_v59 = vshrl.u32 %v2770_v15, 16  ;;  %v2799_v54 = vcombine.low %v545_v40, %v548_v48 }
  0x47   : > { %2192 = vmatpush3.bf16.msra.mxu1 %v1053_v14  ;;  %2161 = vmatprep.mubr.msk.bf16.mxu1 %vm604_vm3, %v2737_v39  ;;  %v561_v61 = vrot.slane %v2652_v53, 5  ;;  %v429_v34 = vrot.slane %v427_v55, 4  ;;  %v436_v6 = vshll.u32 %v2770_v15, 16  ;;  %v552_v1 = vsel %vm2664_vm7, %v1938_v11, %v551_v45 }
  0x48   : > { %v560_v10 = vrot.slane %v558_v13, 4  ;;  %2307 = vmatprep.subr.msk.bf16.mxu1 %vm629_vm0, %v2786_v51  ;;  %v432_v12 = vrot.slane %v430_v5, 5  ;;  %v442_v23 = vrot.slane %v440_v59, 4  ;;  %v555_v16 = vsel %vm2664_vm7, %v553_v47, %v554_v50 }
  0x49   : > { %v438_v53 = vrot.slane %v436_v6, 5  ;;  %v446_v18 = vshll.u32 %v227_v60, 16  ;;  %v1940_v20 = vrot.slane %v2756_v62, 9  ;;  %v565_v27 = vrot.slane %v2770_v15, 5 }
  0x4a   : > { %2180 = vmatmul.mubr.msk.bf16.gmra.mxu0 %vm604_vm3, %v2780_v49  ;;  %v433_v26 = vor.u32 %v432_v12, %v429_v34  ;;  %v568_v31 = vrot.slane %v227_v60, 5  ;;  %v451_v22 = vshrl.u32 %v2813_v25, 16  ;;  %v454_v29 = vshll.u32 %v2813_v25, 16 }
  0x4b   : > { %2183 = vmatprep.mubr.msk.bf16.mxu0 %vm604_vm3, %v2791_v56  ;;  %v443_v14 = vor.u32 %v442_v23, %v438_v53  ;;  %v448_v41 = vrot.slane %v446_v18, 5  ;;  %v464_v3 = vshrl.u32 %v2819_v36, 16  ;;  %v2827_v63 = vcombine.low %v552_v1, %v555_v16 }
  0x4c   : > { %v434_v8 = vrot.slane %v433_v26, 4  ;;  %v566_v45 = vsel %vm2664_vm7, %v1940_v20, %v565_v27  ;;  %v567_v40 = vrot.slane %v565_v27, 4  ;;  %v453_v11 = vrot.slane %v451_v22, 4 }
  0x4d   : > { %v444_v48 = vrot.slane %v443_v14, 4  ;;  %v456_v47 = vrot.slane %v454_v29, 5  ;;  %v460_v50 = vshll.u32 %v2819_v36, 16  ;;  %v466_v59 = vrot.slane %v464_v3, 4 }
  0x4e   : > { %2162 = vmatmul.mubr.msk.bf16.gmra.mxu1 %vm604_vm3, %v2749_v28  ;;  %v439_v55 = vsel %vm2516_vm4, %v434_v8, %v438_v53  ;;  %v569_v5 = vsel %vm2664_vm7, %v567_v40, %v568_v31  ;;  %v470_v60 = vshll.u32 %v230_v19, 16  ;;  %v1941_v16 = vrot.slane %v2813_v25, 9 }
  0x4f   : > { %2165 = vmatprep.mubr.msk.bf16.mxu1 %vm604_vm3, %v2762_v17  ;;  %v449_v34 = vsel %vm2516_vm4, %v444_v48, %v448_v41  ;;  %v2842_v6 = vcombine.low %v566_v45, %v569_v5  ;;  %v457_v1 = vor.u32 %v456_v47, %v453_v11  ;;  %v462_v12 = vrot.slane %v460_v50, 5 }
  0x50   : > { %v2844_v23 = vcombine.low %v439_v55, %v449_v34  ;;  %v572_v53 = vrot.slane %v2819_v36, 5  ;;  %v472_v26 = vrot.slane %v470_v60, 5  ;;  %v575_v27 = vrot.slane %v230_v19, 5 }
  0x51   : > { %v458_v18 = vrot.slane %v457_v1, 4  ;;  %v467_v20 = vor.u32 %v466_v59, %v462_v12  ;;  %v1964_v31 = vcombine.low %v2535_v52, %v2539_v57  ;;  %v1965_v22 = vcombine.low %v2576_v32, %v2589_v44 }
  0x52   : > { %2184 = vmatmul.mubr.msk.bf16.gmra.mxu0 %vm604_vm3, %v2799_v54  ;;  %v2856_v14 = vsel %vm2664_vm7, %v1941_v16, %v572_v53  ;;  %v574_v41 = vrot.slane %v572_v53, 4  ;;  %v559_v52 = vsel %vm2664_vm7, %v1939_v4, %v558_v13  ;;  %v562_v57 = vsel %vm2664_vm7, %v560_v10, %v561_v61 }
  0x53   : > { %2187 = vmatprep.mubr.msk.bf16.mxu0 %vm604_vm3, %v2827_v63  ;;  %v463_v32 = vsel %vm2516_vm4, %v458_v18, %v462_v12  ;;  %v468_v44 = vrot.slane %v467_v20, 4  ;;  %v1983_v13 = vcombine.low %v559_v52, %v562_v57  ;;  %v1966_v61 = vcombine.low %v2632_v35, %v2639_v42  ;;  %v2032_v35 = vld [vmem:[%s3258_s1 + $0xe] sm:$0x3] }
  0x54   : > { %v2872_v29 = vsel %vm2664_vm7, %v574_v41, %v575_v27  ;;  %v1425_v30 = vsel %vm629_vm0, %v2743_v38, 0  ;;  %v1993_v42 = vcombine.low %v2756_v62, %v2770_v15  ;;  %v1549_v38 = vsel %vm629_vm0, %v2032_v35, 0 }
  0x55   : > { %v473_v3 = vsel %vm2516_vm4, %v468_v44, %v472_v26  ;;  %v2043_v19 = vcombine.low %v2856_v14, %v2872_v29 }
  0x56   : > { %2166 = vmatmul.mubr.msk.bf16.gmra.mxu1 %vm604_vm3, %v1964_v31  ;;  %v2879_v4 = vcombine.low %v463_v32, %v473_v3 }
  0x57   : > { %2169 = vmatprep.mubr.msk.bf16.mxu1 %vm604_vm3, %v1965_v22 }
  0x5a   : > { %2188 = vmatmul.mubr.msk.bf16.gmra.mxu0 %vm604_vm3, %v1983_v13 }
  0x5b   : > { %2211 = vmatprep.mubr.msk.bf16.mxu0 %vm604_vm3, %v2578_v33  ;;  %v1301_v33 = vsel %vm629_vm0, %v2786_v51, 0 }
  0x5e   : > { %2170 = vmatmul.mubr.msk.bf16.gmra.mxu1 %vm604_vm3, %v1966_v61 }
  0x5f   : > { %2193 = vmatprep.mubr.msk.bf16.mxu1 %vm604_vm3, %v2731_v37  ;;  %v1673_v37 = vsel %vm629_vm0, %v2042_v24, 0 }
  0x62   : > { %2212 = vmatmul.mubr.msk.bf16.vlgmr.msra.gmra.mxu0 %vm604_vm3, %v2641_v43 }
  0x63   : > { %2246 = vmatpush3.bf16.msra.mxu0 %v1425_v30  ;;  %2215 = vmatprep.mubr.msk.bf16.mxu0 %vm604_vm3, %v2678_v46 }
  0x64   : > { %2310 = vmatprep.subr.msk.bf16.mxu0 %vm629_vm0, %v2042_v24 }
  0x66   : > { %2194 = vmatmul.mubr.msk.bf16.vlgmr.msra.gmra.mxu1 %vm604_vm3, %v2737_v39 }
  0x67   : > { %2228 = vmatpush3.bf16.msra.mxu1 %v1301_v33  ;;  %2197 = vmatprep.mubr.msk.bf16.mxu1 %vm604_vm3, %v2749_v28 }
  0x68   : > { %2309 = vmatprep.subr.msk.bf16.mxu1 %vm629_vm0, %v2032_v35 }
  0x6a   : > { %2216 = vmatmul.mubr.msk.bf16.gmra.mxu0 %vm604_vm3, %v2555_v7 }
  0x6b   : > { %2219 = vmatprep.mubr.msk.bf16.mxu0 %vm604_vm3, %v2613_v9 }
  0x6e   : > { %2198 = vmatmul.mubr.msk.bf16.gmra.mxu1 %vm604_vm3, %v2762_v17 }
  0x6f   : > { %2201 = vmatprep.mubr.msk.bf16.mxu1 %vm604_vm3, %v1964_v31 }
  0x72   : > { %2220 = vmatmul.mubr.msk.bf16.gmra.mxu0 %vm604_vm3, %v2659_v2 }
  0x73   : > { %2223 = vmatprep.mubr.msk.bf16.mxu0 %vm604_vm3, %v2705_v0 }
  0x76   : > { %2202 = vmatmul.mubr.msk.bf16.gmra.mxu1 %vm604_vm3, %v1965_v22 }
  0x77   : > { %2205 = vmatprep.mubr.msk.bf16.mxu1 %vm604_vm3, %v1966_v61 }
  0x7a   : > { %2224 = vmatmul.mubr.msk.bf16.gmra.mxu0 %vm604_vm3, %v2844_v23 }
  0x7b   : > { %2247 = vmatprep.mubr.msk.bf16.mxu0 %vm604_vm3, %v2737_v39 }
  0x7e   : > { %2206 = vmatmul.mubr.msk.bf16.gmra.mxu1 %vm604_vm3, %v1993_v42 }
  0x7f   : > { %2229 = vmatprep.mubr.msk.bf16.mxu1 %vm604_vm3, %v2710_v58  ;;  %v2023_v58 = vcombine.low %v2813_v25, %v2819_v36 }
  0x82   : > { %2248 = vmatmul.mubr.msk.bf16.vlgmr.msra.gmra.mxu0 %vm604_vm3, %v2749_v28 }
  0x83   : > { %2282 = vmatpush3.bf16.msra.mxu0 %v1673_v37  ;;  %2251 = vmatprep.mubr.msk.bf16.mxu0 %vm604_vm3, %v2762_v17 }
  0x86   : > { %2230 = vmatmul.mubr.msk.bf16.vlgmr.msra.gmra.mxu1 %vm604_vm3, %v2722_v21 }
  0x87   : > { %2264 = vmatpush3.bf16.msra.mxu1 %v1549_v38  ;;  %2233 = vmatprep.mubr.msk.bf16.mxu1 %vm604_vm3, %v2780_v49 }
  0x8a   : > { %2252 = vmatmul.mubr.msk.bf16.gmra.mxu0 %vm604_vm3, %v1964_v31 }
  0x8b   : > { %2255 = vmatprep.mubr.msk.bf16.mxu0 %vm604_vm3, %v1965_v22 }
  0x8e   : > { %2234 = vmatmul.mubr.msk.bf16.gmra.mxu1 %vm604_vm3, %v2791_v56 }
  0x8f   : > { %2237 = vmatprep.mubr.msk.bf16.mxu1 %vm604_vm3, %v2799_v54 }
  0x92   : > { %2256 = vmatmul.mubr.msk.bf16.gmra.mxu0 %vm604_vm3, %v1966_v61 }
  0x93   : > { %2259 = vmatprep.mubr.msk.bf16.mxu0 %vm604_vm3, %v1993_v42 }
  0x96   : > { %2238 = vmatmul.mubr.msk.bf16.gmra.mxu1 %vm604_vm3, %v2827_v63 }
  0x97   : > { %2241 = vmatprep.mubr.msk.bf16.mxu1 %vm604_vm3, %v1983_v13 }
  0x9a   : > { %2260 = vmatmul.mubr.msk.bf16.gmra.mxu0 %vm604_vm3, %v2023_v58 }
  0x9b   : > { %2283 = vmatprep.mubr.msk.bf16.mxu0 %vm604_vm3, %v2722_v21 }
  0x9e   : > { %2242 = vmatmul.mubr.msk.bf16.gmra.mxu1 %vm604_vm3, %v2842_v6 }
  0x9f   : > { %2265 = vmatprep.mubr.msk.bf16.mxu1 %vm604_vm3, %v2641_v43 }
  0xa2   : > { %2284 = vmatmul.mubr.msk.bf16.vlgmr.msra.gmra.mxu0 %vm604_vm3, %v2780_v49 }
  0xa3   : > { %2287 = vmatprep.mubr.msk.bf16.mxu0 %vm604_vm3, %v2791_v56 }
  0xa6   : > { %2266 = vmatmul.mubr.msk.bf16.vlgmr.msra.gmra.mxu1 %vm604_vm3, %v2678_v46 }
  0xa7   : > { %2269 = vmatprep.mubr.msk.bf16.mxu1 %vm604_vm3, %v2555_v7 }
  0xaa   : > { %2288 = vmatmul.mubr.msk.bf16.gmra.mxu0 %vm604_vm3, %v2799_v54 }
  0xab   : > { %2291 = vmatprep.mubr.msk.bf16.mxu0 %vm604_vm3, %v2827_v63 }
  0xae   : > { %2270 = vmatmul.mubr.msk.bf16.gmra.mxu1 %vm604_vm3, %v2613_v9 }
  0xaf   : > { %2273 = vmatprep.mubr.msk.bf16.mxu1 %vm604_vm3, %v2659_v2 }
  0xb2   : > { %2292 = vmatmul.mubr.msk.bf16.gmra.mxu0 %vm604_vm3, %v1983_v13 }
  0xb3   : > { %2295 = vmatprep.mubr.msk.bf16.mxu0 %vm604_vm3, %v2842_v6 }
  0xb6   : > { %2274 = vmatmul.mubr.msk.bf16.gmra.mxu1 %vm604_vm3, %v2705_v0 }
  0xb7   : > { %2277 = vmatprep.mubr.msk.bf16.mxu1 %vm604_vm3, %v2844_v23 }
  0xba   : > { %2296 = vmatmul.mubr.msk.bf16.gmra.mxu0 %vm604_vm3, %v2043_v19 }
  0xbe   : > { %2278 = vmatmul.mubr.msk.bf16.gmra.mxu1 %vm604_vm3, %v2879_v4 }
  0xe9   : > { %v2141_v7 = vpop.f32.mrf.mxu0 }
  0xeb   : > { %v667_v43 = vpop.f32.mrf.mxu0 }
  0xed   : > { %v2142_v46 = vpop.f32.mrf.mxu0 }
  0xee   : > { %v2149_v9 = vpop.f32.mrf.mxu1 }
  0xef   : > { %v670_v39 = vpop.f32.mrf.mxu0 }
  0xf0   : > { %v699_v2 = vpop.f32.mrf.mxu1 }
  0xf2   : > { %v2150_v21 = vpop.f32.mrf.mxu1 }
  0xf4   : > { %v702_v28 = vpop.f32.mrf.mxu1 }
  0xfa   : > { %v2145_v0 = vpop.f32.mrf.mxu0 }
  0xfc   : > { %v683_v62 = vpop.f32.mrf.mxu0 }
  0xfe   : > { %v2153_v17 = vpop.f32.mrf.mxu1  ;;  %v2146_v15 = vpop.f32.mrf.mxu0 }
 0x100   : > { %v715_v49 = vpop.f32.mrf.mxu1  ;;  %v686_v51 = vpop.f32.mrf.mxu0 }
 0x102   : > { %v2154_v56 = vpop.f32.mrf.mxu1  ;;  %v2177_v54 = vpop.f32.mrf.mxu0 }
 0x104   : > { %v2991_v10 = vpop.f32.mrf.mxu1  ;;  %v965_v25 = vpop.f32.mrf.mxu0 }
 0x106   : > { %v2159_v36 = vpop.f32.mrf.mxu1  ;;  %v2178_v63 = vpop.f32.mrf.mxu0 }
 0x107   : > { %v824_v8 = vadd.f32 %v2159_v36, %v2141_v7 }
 0x108   : > { %v815_v45 = vpop.f32.mrf.mxu1  ;;  %v968_v40 = vpop.f32.mrf.mxu0 }
 0x109   : > { %v2993_v48 = vadd.f32 %v2177_v54, %v824_v8  ;;  %v816_v11 = vadd.f32 %v815_v45, %v667_v43 }
 0x10a   : > { %v2160_v47 = vpop.f32.mrf.mxu1  ;;  %v2181_v50 = vpop.f32.mrf.mxu0 }
 0x10b   : > { %v2995_v55 = vadd.f32 %v965_v25, %v816_v11  ;;  %v827_v5 = vadd.f32 %v2160_v47, %v2142_v46 }
 0x10c   : > { %v818_v59 = vpop.f32.mrf.mxu1  ;;  %v981_v60 = vpop.f32.mrf.mxu0 }
 0x10d   : > { %v2997_v34 = vadd.f32 %v2178_v63, %v827_v5  ;;  %v819_v6 = vadd.f32 %v818_v59, %v670_v39 }
 0x10e   : > { %v2163_v1 = vpop.f32.mrf.mxu1  ;;  %v2182_v12 = vpop.f32.mrf.mxu0 }
 0x10f   : > { %v2999_v23 = vadd.f32 %v968_v40, %v819_v6  ;;  %v840_v16 = vadd.f32 %v2163_v1, %v2145_v0 }
 0x110   : > { %v831_v53 = vpop.f32.mrf.mxu1  ;;  %v984_v18 = vpop.f32.mrf.mxu0 }
 0x111   : > { %v3001_v20 = vadd.f32 %v2181_v50, %v840_v16  ;;  %v832_v26 = vadd.f32 %v831_v53, %v683_v62 }
 0x112   : > { %v2164_v27 = vpop.f32.mrf.mxu1  ;;  %v2185_v31 = vpop.f32.mrf.mxu0 }
 0x113   : > { %v3003_v22 = vadd.f32 %v981_v60, %v832_v26  ;;  %v843_v14 = vadd.f32 %v2164_v27, %v2146_v15 }
 0x114   : > { %v834_v41 = vpop.f32.mrf.mxu1  ;;  %v997_v52 = vpop.f32.mrf.mxu0 }
 0x115   : > { %v3005_v57 = vadd.f32 %v2182_v12, %v843_v14  ;;  %v835_v32 = vadd.f32 %v834_v41, %v686_v51 }
 0x116   : > { %v2167_v44 = vpop.f32.mrf.mxu1  ;;  %v2186_v29 = vpop.f32.mrf.mxu0 }
 0x117   : > { %v3007_v3 = vadd.f32 %v984_v18, %v835_v32  ;;  %v856_v19 = vadd.f32 %v2167_v44, %v2149_v9 }
 0x118   : > { %v847_v13 = vpop.f32.mrf.mxu1  ;;  %v1000_v4 = vpop.f32.mrf.mxu0 }
 0x119   : > { %v3009_v61 = vadd.f32 %v2185_v31, %v856_v19  ;;  %v848_v30 = vadd.f32 %v847_v13, %v699_v2 }
 0x11a   : > { %v2168_v24 = vpop.f32.mrf.mxu1  ;;  %v2189_v33 = vpop.f32.mrf.mxu0 }
 0x11b   : > { %v3011_v35 = vadd.f32 %v997_v52, %v848_v30  ;;  %v859_v42 = vadd.f32 %v2168_v24, %v2150_v21 }
 0x11c   : > { %v850_v37 = vpop.f32.mrf.mxu1  ;;  %v1013_v38 = vpop.f32.mrf.mxu0 }
 0x11d   : > { %v3013_v58 = vadd.f32 %v2186_v29, %v859_v42  ;;  %v851_v7 = vadd.f32 %v850_v37, %v702_v28 }
 0x11e   : > { %v2171_v43 = vpop.f32.mrf.mxu1  ;;  %v2190_v46 = vpop.f32.mrf.mxu0 }
 0x11f   : > { %v3015_v39 = vadd.f32 %v1000_v4, %v851_v7  ;;  %v872_v9 = vadd.f32 %v2171_v43, %v2153_v17 }
 0x120   : > { %v863_v0 = vpop.f32.mrf.mxu1  ;;  %v1016_v62 = vpop.f32.mrf.mxu0 }
 0x121   : > { %v3017_v15 = vadd.f32 %v2189_v33, %v872_v9  ;;  %v864_v2 = vadd.f32 %v863_v0, %v715_v49 }
 0x122   : > { %v2172_v51 = vpop.f32.mrf.mxu1  ;;  %v3019_v54 = vpop.f32.mrf.mxu0 }
 0x123   : > { %v3021_v25 = vadd.f32 %v1013_v38, %v864_v2  ;;  %v875_v21 = vadd.f32 %v2172_v51, %v2154_v56 }
 0x124   : > { %v866_v36 = vpop.f32.mrf.mxu1  ;;  %v3023_v63 = vpop.f32.mrf.mxu0 }
 0x125   : > { %3265 = vst [vmem:[#allocation2_spill] sm:$0xff] %v3021_v25  ;;  %v3025_v28 = vadd.f32 %v2190_v46, %v875_v21  ;;  %v867_v8 = vadd.f32 %v866_v36, %v2991_v10 }
 0x126   : > { %v2195_v45 = vpop.f32.mrf.mxu1  ;;  %v3028_v17 = vpop.f32.mrf.mxu0 }
 0x127   : > { %3266 = vst [vmem:[#allocation3_spill] sm:$0xff] %v3025_v28  ;;  %v3030_v40 = vadd.f32 %v1016_v62, %v867_v8 }
 0x128   : > { %v1089_v11 = vpop.f32.mrf.mxu1  ;;  %v3032_v49 = vpop.f32.mrf.mxu0 }
 0x129   : > { %3267 = vst [vmem:[#allocation4_spill] sm:$0xff] %v3030_v40  ;;  %v1152_v25 = vadd.f32 %v1089_v11, %v2995_v55 }
 0x12a   : > { %v2196_v47 = vpop.f32.mrf.mxu1  ;;  %v3034_v50 = vpop.f32.mrf.mxu0 }
 0x12c   : > { %v1092_v5 = vpop.f32.mrf.mxu1  ;;  %v3036_v56 = vpop.f32.mrf.mxu0 }
 0x12e   : > { %v3038_v59 = vpop.f32.mrf.mxu1  ;;  %v3040_v60 = vpop.f32.mrf.mxu0 }
 0x12f   : > { %v1158_v55 = vadd.f32 %v3038_v59, %v3001_v20 }
 0x130   : > { %v3042_v6 = vpop.f32.mrf.mxu1  ;;  %v3044_v10 = vpop.f32.mrf.mxu0 }
 0x132   : > { %v3046_v1 = vpop.f32.mrf.mxu1  ;;  %v3048_v12 = vpop.f32.mrf.mxu0 }
 0x133   : > { %v1159_v20 = vadd.f32 %v3046_v1, %v3005_v57 }
 0x134   : > { %v3050_v16 = vpop.f32.mrf.mxu1  ;;  %v3052_v53 = vpop.f32.mrf.mxu0 }
 0x136   : > { %v3054_v18 = vpop.f32.mrf.mxu1  ;;  %v3056_v26 = vpop.f32.mrf.mxu0 }
 0x138   : > { %v3058_v27 = vpop.f32.mrf.mxu1  ;;  %v3060_v31 = vpop.f32.mrf.mxu0 }
 0x139   : > { %3268 = vst [vmem:[#allocation5_spill] sm:$0xff] %v3060_v31 }
 0x13a   : > { %v3062_v14 = vpop.f32.mrf.mxu1  ;;  %v3064_v41 = vpop.f32.mrf.mxu0 }
 0x13b   : > { %3269 = vst [vmem:[#allocation6_spill] sm:$0xff] %v3064_v41 }
 0x13c   : > { %v3066_v52 = vpop.f32.mrf.mxu1  ;;  %v3068_v32 = vpop.f32.mrf.mxu0 }
 0x13d   : > { %3270 = vst [vmem:[#allocation7_spill] sm:$0xff] %v3068_v32 }
 0x13e   : > { %v3070_v44 = vpop.f32.mrf.mxu1  ;;  %v3072_v29 = vpop.f32.mrf.mxu0 }
 0x13f   : > { %3271 = vst [vmem:[#allocation8_spill] sm:$0xff] %v3072_v29 }
 0x140   : > { %v3074_v19 = vpop.f32.mrf.mxu1  ;;  %v3076_v13 = vpop.f32.mrf.mxu0 }
 0x141   : > { %3272 = vst [vmem:[#allocation9_spill] sm:$0xff] %v3074_v19  ;;  %3273 = vst [vmem:[#allocation10_spill] sm:$0xff] %v3076_v13 }
 0x142   : > { %v3078_v4 = vpop.f32.mrf.mxu1  ;;  %v2249_v30 = vpop.f32.mrf.mxu0 }
 0x143   : > { %3274 = vst [vmem:[#allocation11_spill] sm:$0xff] %v3078_v4 }
 0x144   : > { %v3080_v24 = vpop.f32.mrf.mxu1  ;;  %v1461_v33 = vpop.f32.mrf.mxu0 }
 0x145   : > { %3275 = vst [vmem:[#allocation12_spill] sm:$0xff] %v3080_v24 }
 0x146   : > { %v2231_v42 = vpop.f32.mrf.mxu1  ;;  %v3082_v37 = vpop.f32.mrf.mxu0 }
 0x148   : > { %v1337_v38 = vpop.f32.mrf.mxu1  ;;  %v3084_v7 = vpop.f32.mrf.mxu0 }
 0x14a   : > { %v2232_v43 = vpop.f32.mrf.mxu1  ;;  %v3086_v46 = vpop.f32.mrf.mxu0 }
 0x14c   : > { %v1340_v9 = vpop.f32.mrf.mxu1  ;;  %v3088_v0 = vpop.f32.mrf.mxu0 }
 0x14e   : > { %v2235_v62 = vpop.f32.mrf.mxu1  ;;  %v3090_v2 = vpop.f32.mrf.mxu0 }
 0x150   : > { %v1353_v51 = vpop.f32.mrf.mxu1  ;;  %v3092_v21 = vpop.f32.mrf.mxu0 }
 0x151   : > { %3276 = vst [vmem:[#allocation13_spill] sm:$0xff] %v3092_v21 }
 0x152   : > { %v3094_v36 = vpop.f32.mrf.mxu1  ;;  %v3096_v8 = vpop.f32.mrf.mxu0 }
 0x153   : > { %3277 = vst [vmem:[#allocation14_spill] sm:$0xff] %v3096_v8  ;;  %v1154_v8 = vadd.f32 %v2195_v45, %v2993_v48  ;;  %v1276_v48 = vadd.f32 %v3023_v63, %v1152_v25  ;;  %v1153_v45 = vadd.f32 %v1092_v5, %v2999_v23 }
 0x154   : > { %v3098_v13 = vpop.f32.mrf.mxu1  ;;  %v3100_v29 = vpop.f32.mrf.mxu0 }
 0x155   : > { %3278 = vst [vmem:[#allocation15_spill] sm:$0xff] %v3100_v29  ;;  %v1277_v23 = vadd.f32 %v3032_v49, %v1153_v45  ;;  %v3153_v49 = vld [vmem:[%s3259_s2] ss:$0 sm:$0xff] }
 0x156   : > { %v3102_v24 = vpop.f32.mrf.mxu1  ;;  %v3104_v40 = vpop.f32.mrf.mxu0 }
 0x157   : > { %3279 = vst [vmem:[#allocation16_spill] sm:$0xff] %v3104_v40 }
 0x158   : > { %v3107_v32 = vpop.f32.mrf.mxu1  ;;  %v3109_v4 = vpop.f32.mrf.mxu0 }
 0x159   : > { %3280 = vst [vmem:[#allocation17_spill] sm:$0xff] %v3109_v4  ;;  %v1278_v4 = vadd.f32 %v3019_v54, %v1154_v8 }
 0x15a   : > { %v3111_v28 = vpop.f32.mrf.mxu1  ;;  %v3113_v41 = vpop.f32.mrf.mxu0 }
 0x15b   : > { %3281 = vst [vmem:[#allocation18_spill] sm:$0xff] %v3111_v28  ;;  %3282 = vst [vmem:[#allocation19_spill] sm:$0xff] %v3113_v41  ;;  %v1155_v28 = vadd.f32 %v2196_v47, %v2997_v34  ;;  %v1400_v34 = vadd.f32 %v1337_v38, %v1276_v48  ;;  %v1156_v47 = vadd.f32 %v3042_v6, %v3003_v22 }
 0x15c   : > { %v3116_v19 = vpop.f32.mrf.mxu1  ;;  %v3118_v29 = vpop.f32.mrf.mxu0  ;;  %v1157_v6 = vadd.f32 %v3050_v16, %v3007_v3 }
 0x15d   : > { %3283 = vst [vmem:[#allocation20_spill] sm:$0xff] %v3118_v29  ;;  %v1402_v29 = vadd.f32 %v2231_v42, %v1278_v4  ;;  %v1279_v54 = vadd.f32 %v3028_v17, %v1155_v28  ;;  %v1282_v4 = vadd.f32 %v3034_v50, %v1158_v55  ;;  %v1524_v28 = vadd.f32 %v1461_v33, %v1400_v34 }
 0x15e   : > { %v3121_v40 = vpop.f32.mrf.mxu1  ;;  %v3123_v31 = vpop.f32.mrf.mxu0  ;;  %v1401_v17 = vadd.f32 %v1340_v9, %v1277_v23  ;;  %v1280_v22 = vadd.f32 %v3036_v56, %v1156_v47  ;;  %v1283_v33 = vadd.f32 %v3040_v60, %v1159_v20  ;;  %v1162_v56 = vadd.f32 %v3054_v18, %v3009_v61 }
 0x15f   : > { %3284 = vst [vmem:[#allocation21_spill] sm:$0xff] %v3123_v31  ;;  %v1526_v63 = vadd.f32 %v2249_v30, %v1402_v29  ;;  %v1403_v5 = vadd.f32 %v2232_v43, %v1279_v54  ;;  %v1406_v48 = vadd.f32 %v2235_v62, %v1282_v4  ;;  %v1281_v60 = vadd.f32 %v3044_v10, %v1157_v6  ;;  %v3286_v6 = vld [vmem:[#allocation5_spill] sm:$0xff] }
 0x160   : > { %v3127_v21 = vpop.f32.mrf.mxu1  ;;  %v3129_v41 = vpop.f32.mrf.mxu0  ;;  %v1404_v43 = vadd.f32 %v1353_v51, %v1280_v22  ;;  %v1525_v9 = vadd.f32 %v3084_v7, %v1401_v17  ;;  %v1160_v61 = vadd.f32 %v3058_v27, %v3011_v35  ;;  %v1407_v55 = vadd.f32 %v3094_v36, %v1283_v33 }
 0x161   : > { %v1527_v57 = vadd.f32 %v3082_v37, %v1403_v5  ;;  %v1530_v18 = vadd.f32 %v3086_v46, %v1406_v48  ;;  %v1286_v47 = vadd.f32 %v3048_v12, %v1162_v56  ;;  %v1163_v10 = vadd.f32 %v3062_v14, %v3013_v58 }
 0x162   : > { %v3136_v11 = vpop.f32.mrf.mxu1  ;;  %v2285_v31 = vpop.f32.mrf.mxu0  ;;  %v1405_v46 = vadd.f32 %v3098_v13, %v1281_v60  ;;  %v1284_v5 = vadd.f32 %v3052_v53, %v1160_v61  ;;  %v1161_v12 = vadd.f32 %v3066_v52, %v3015_v39  ;;  %v1166_v53 = vadd.f32 %v3070_v44, %v3017_v15 }
 0x163   : > { %v1410_v4 = vadd.f32 %v3102_v24, %v1286_v47  ;;  %v3285_v24 = vld [vmem:[#allocation13_spill] sm:$0xff]  ;;  %v3296_v47 = vld [vmem:[#allocation4_spill] sm:$0xff] }
 0x164   : > { %v3141_v8 = vpop.f32.mrf.mxu1  ;;  %v1709_v25 = vpop.f32.mrf.mxu0  ;;  %v1529_v17 = vadd.f32 %v3285_v24, %v1405_v46  ;;  %v1285_v48 = vadd.f32 %v3286_v6, %v1161_v12  ;;  %v3299_v12 = vld [vmem:[#allocation8_spill] sm:$0xff] }
 0x166   : > { %v2267_v59 = vpop.f32.mrf.mxu1  ;;  %v2286_v42 = vpop.f32.mrf.mxu0 }
 0x167   : > { %v1650_v38 = vadd.f32 %v2267_v59, %v1526_v63 }
 0x168   : > { %v1585_v50 = vpop.f32.mrf.mxu1  ;;  %v1712_v29 = vpop.f32.mrf.mxu0 }
 0x169   : > { %v1774_v1 = vadd.f32 %v2285_v31, %v1650_v38  ;;  %v1648_v30 = vadd.f32 %v1585_v50, %v1524_v28  ;;  %v1408_v28 = vadd.f32 %v3107_v32, %v1284_v5  ;;  %v3287_v50 = vld [vmem:[#allocation2_spill] sm:$0xff] }
 0x16a   : > { %v2268_v3 = vpop.f32.mrf.mxu1  ;;  %v2289_v16 = vpop.f32.mrf.mxu0  ;;  %v3290_v32 = vld [vmem:[#allocation18_spill] sm:$0xff] }
 0x16b   : > { %v1797_v37 = vadd.f32 %v3153_v49, %v1774_v1  ;;  %v1772_v31 = vadd.f32 %v1709_v25, %v1648_v30  ;;  %v1651_v62 = vadd.f32 %v2268_v3, %v1527_v57  ;;  %v1528_v25 = vadd.f32 %v3088_v0, %v1404_v43  ;;  %v3289_v57 = vld [vmem:[#allocation14_spill] sm:$0xff] }
 0x16c   : > { %v1588_v51 = vpop.f32.mrf.mxu1  ;;  %v1725_v45 = vpop.f32.mrf.mxu0  ;;  %v1531_v0 = vadd.f32 %v3090_v2, %v1407_v55  ;;  %v1534_v1 = vadd.f32 %v3289_v57, %v1410_v4  ;;  %v3291_v3 = vld [vmem:[#allocation6_spill] sm:$0xff] }
 0x16d   : > { %1813 = vst [vmem:[%s3162_s30 + $0x10] sm:$0xff] %v1797_v37  ;;  %v1795_v54 = vadd.f32 %v3153_v49, %v1772_v31  ;;  %v1775_v7 = vadd.f32 %v2286_v42, %v1651_v62  ;;  %v1649_v34 = vadd.f32 %v1588_v51, %v1525_v9  ;;  %v1287_v42 = vadd.f32 %v3056_v26, %v1163_v10  ;;  %v3292_v9 = vld [vmem:[#allocation3_spill] sm:$0xff]  ;;  %v3297_v10 = vld [vmem:[#allocation12_spill] sm:$0xff] }
 0x16e   : > { %v2271_v35 = vpop.f32.mrf.mxu1  ;;  %v2290_v27 = vpop.f32.mrf.mxu0  ;;  %v3293_v37 = vld [vmem:[#allocation11_spill] sm:$0xff]  ;;  %v1409_v51 = vadd.f32 %v3116_v19, %v1285_v48 }
 0x16f   : > { %1811 = vst [vmem:[%s3162_s30] sm:$0xff] %v1795_v54  ;;  %v1798_v36 = vadd.f32 %v3153_v49, %v1775_v7  ;;  %v1773_v23 = vadd.f32 %v1712_v29, %v1649_v34  ;;  %v1654_v63 = vadd.f32 %v2271_v35, %v1530_v18  ;;  %v3288_v29 = vld [vmem:[#allocation9_spill] sm:$0xff]  ;;  %v1411_v30 = vadd.f32 %v3290_v32, %v1287_v42  ;;  %v3294_v62 = vld [vmem:[#allocation15_spill] sm:$0xff] }
 0x170   : > { %v1601_v58 = vpop.f32.mrf.mxu1  ;;  %v1728_v14 = vpop.f32.mrf.mxu0  ;;  %v1164_v26 = vadd.f32 %v3288_v29, %v3287_v50  ;;  %v1167_v31 = vadd.f32 %v3293_v37, %v3292_v9  ;;  %v1532_v60 = vadd.f32 %v3294_v62, %v1408_v28  ;;  %v3295_v7 = vld [vmem:[#allocation7_spill] sm:$0xff] }
 0x171   : > { %1814 = vst [vmem:[%s3162_s30 + $0x18] sm:$0xff] %v1798_v36  ;;  %v1796_v13 = vadd.f32 %v3153_v49, %v1773_v23  ;;  %v1778_v20 = vadd.f32 %v2289_v16, %v1654_v63  ;;  %v1652_v59 = vadd.f32 %v1601_v58, %v1528_v25  ;;  %v1290_v16 = vadd.f32 %v3291_v3, %v1166_v53  ;;  %v3298_v36 = vld [vmem:[#allocation16_spill] sm:$0xff]  ;;  %v3301_v53 = vld [vmem:[#allocation10_spill] sm:$0xff] }
 0x172   : > { %v2272_v39 = vpop.f32.mrf.mxu1  ;;  %v2293_v52 = vpop.f32.mrf.mxu0  ;;  %v1288_v34 = vadd.f32 %v3295_v7, %v1164_v26  ;;  %v1165_v25 = vadd.f32 %v3297_v10, %v3296_v47  ;;  %v1535_v23 = vadd.f32 %v3298_v36, %v1411_v30  ;;  %v1291_v4 = vadd.f32 %v3299_v12, %v1167_v31 }
 0x173   : > { %1812 = vst [vmem:[%s3162_s30 + $0x8] sm:$0xff] %v1796_v13  ;;  %v1801_v2 = vadd.f32 %v3153_v49, %v1778_v20  ;;  %v1776_v38 = vadd.f32 %v1725_v45, %v1652_v59  ;;  %v1655_v22 = vadd.f32 %v2272_v39, %v1531_v0  ;;  %v1414_v35 = vadd.f32 %v3121_v40, %v1290_v16  ;;  %v3300_v13 = vld [vmem:[#allocation17_spill] sm:$0xff]  ;;  %v3302_v39 = vld [vmem:[#allocation19_spill] sm:$0xff] }
 0x174   : > { %v1604_v15 = vpop.f32.mrf.mxu1  ;;  %v1741_v44 = vpop.f32.mrf.mxu0  ;;  %v1412_v58 = vadd.f32 %v3127_v21, %v1288_v34  ;;  %v1533_v20 = vadd.f32 %v3300_v13, %v1409_v51  ;;  %v1289_v28 = vadd.f32 %v3301_v53, %v1165_v25 }
 0x175   : > { %1817 = vst [vmem:[%s3162_s30 + $0x30] sm:$0xff] %v1801_v2  ;;  %v1799_v33 = vadd.f32 %v3153_v49, %v1776_v38  ;;  %v1779_v56 = vadd.f32 %v2290_v27, %v1655_v22  ;;  %v1653_v43 = vadd.f32 %v1604_v15, %v1529_v17  ;;  %v1538_v24 = vadd.f32 %v3302_v39, %v1414_v35  ;;  %v3303_v22 = vld [vmem:[#allocation20_spill] sm:$0xff] }
 0x176   : > { %v2275_v61 = vpop.f32.mrf.mxu1  ;;  %v2294_v18 = vpop.f32.mrf.mxu0  ;;  %v1415_v17 = vadd.f32 %v3136_v11, %v1291_v4  ;;  %v1536_v6 = vadd.f32 %v3303_v22, %v1412_v58  ;;  %v1413_v29 = vadd.f32 %v3141_v8, %v1289_v28  ;;  %v3304_v11 = vld [vmem:[#allocation21_spill] sm:$0xff] }
 0x177   : > { %1815 = vst [vmem:[%s3162_s30 + $0x20] sm:$0xff] %v1799_v33  ;;  %v1802_v45 = vadd.f32 %v3153_v49, %v1779_v56  ;;  %v1777_v55 = vadd.f32 %v1728_v14, %v1653_v43  ;;  %v1658_v54 = vadd.f32 %v2275_v61, %v1534_v1 }
 0x178   : > { %v1617_v27 = vpop.f32.mrf.mxu1  ;;  %v1744_v46 = vpop.f32.mrf.mxu0  ;;  %v1537_v8 = vadd.f32 %v3129_v41, %v1413_v29 }
 0x179   : > { %1818 = vst [vmem:[%s3162_s30 + $0x38] sm:$0xff] %v1802_v45  ;;  %v1800_v19 = vadd.f32 %v3153_v49, %v1777_v55  ;;  %v1782_v63 = vadd.f32 %v2293_v52, %v1658_v54  ;;  %v1656_v5 = vadd.f32 %v1617_v27, %v1532_v60 }
 0x17a   : > { %v2276_v14 = vpop.f32.mrf.mxu1  ;;  %v2297_v0 = vpop.f32.mrf.mxu0 }
 0x17b   : > { %1816 = vst [vmem:[%s3162_s30 + $0x28] sm:$0xff] %v1800_v19  ;;  %v1805_v40 = vadd.f32 %v3153_v49, %v1782_v63  ;;  %v1780_v59 = vadd.f32 %v1741_v44, %v1656_v5  ;;  %v1659_v42 = vadd.f32 %v2276_v14, %v1535_v23  ;;  %v1539_v44 = vadd.f32 %v3304_v11, %v1415_v17 }
 0x17c   : > { %v1620_v52 = vpop.f32.mrf.mxu1  ;;  %v1757_v50 = vpop.f32.mrf.mxu0 }
 0x17d   : > { %1821 = vst [vmem:[%s3162_s30 + $0x50] sm:$0xff] %v1805_v40  ;;  %v1803_v21 = vadd.f32 %v3153_v49, %v1780_v59  ;;  %v1783_v2 = vadd.f32 %v2294_v18, %v1659_v42  ;;  %v1657_v38 = vadd.f32 %v1620_v52, %v1533_v20 }
 0x17e   : > { %v2279_v48 = vpop.f32.mrf.mxu1  ;;  %v2298_v43 = vpop.f32.mrf.mxu0 }
 0x17f   : > { %1819 = vst [vmem:[%s3162_s30 + $0x40] sm:$0xff] %v1803_v21  ;;  %v1806_v26 = vadd.f32 %v3153_v49, %v1783_v2  ;;  %v1781_v57 = vadd.f32 %v1744_v46, %v1657_v38  ;;  %v1662_v1 = vadd.f32 %v2279_v48, %v1538_v24 }
 0x180   : > { %v1633_v15 = vpop.f32.mrf.mxu1  ;;  %v1760_v61 = vpop.f32.mrf.mxu0 }
 0x181   : > { %1822 = vst [vmem:[%s3162_s30 + $0x58] sm:$0xff] %v1806_v26  ;;  %v1804_v32 = vadd.f32 %v3153_v49, %v1781_v57  ;;  %v1786_v30 = vadd.f32 %v2297_v0, %v1662_v1  ;;  %v1660_v33 = vadd.f32 %v1633_v15, %v1536_v6 }
 0x182   : > { %v2280_v56 = vpop.f32.mrf.mxu1 }
 0x183   : > { %1820 = vst [vmem:[%s3162_s30 + $0x48] sm:$0xff] %v1804_v32  ;;  %v1809_v3 = vadd.f32 %v3153_v49, %v1786_v30  ;;  %v1784_v16 = vadd.f32 %v1757_v50, %v1660_v33  ;;  %v1663_v9 = vadd.f32 %v2280_v56, %v1539_v44 }
 0x184   : > { %v1636_v37 = vpop.f32.mrf.mxu1 }
 0x185   : > { %1825 = vst [vmem:[%s3162_s30 + $0x70] sm:$0xff] %v1809_v3  ;;  %v1807_v31 = vadd.f32 %v3153_v49, %v1784_v16  ;;  %v1787_v62 = vadd.f32 %v2298_v43, %v1663_v9  ;;  %v1661_v60 = vadd.f32 %v1636_v37, %v1537_v8 }
 0x187   : > { %1823 = vst [vmem:[%s3162_s30 + $0x60] sm:$0xff] %v1807_v31  ;;  %v1810_v18 = vadd.f32 %v3153_v49, %v1787_v62  ;;  %v1785_v51 = vadd.f32 %v1760_v61, %v1661_v60 }
 0x189   : > { %1826 = vst [vmem:[%s3162_s30 + $0x78] sm:$0xff] %v1810_v18  ;;  %v1808_v41 = vadd.f32 %v3153_v49, %v1785_v51 }
 0x18b   : > { %1824 = vst [vmem:[%s3162_s30 + $0x68] sm:$0xff] %v1808_v41 }
 0x18c PF: > { %s13_s16 = sadd.s32 1, %s2400_s16   ;;  %s3305_s12 = smov %s2392_s14 }
 0x18d   : > { %p10_p7 = scmp.ge.s32.totalorder %s13_s16, 6   ;;  %s3306_s13 = smov %s2396_s15 }
 0x18e   : > { %s3307_s14 = smov %s3310_s17  ;;  %s3308_s15 = smov %s3314_s18 }
 0x18f   :  { %12 = sbr.rel (!%p10_p7) target bundleno = 3 (0x3), region = 71 }

</bundles_post_ra>
